<compile_context>
chip_gen: v7x
topology: tpu7x:2x2x1
jax: 0.10.0
libtpu: 0.0.40
codegen_flags: <defaults>
</compile_context>

<pallas_src>
import functools
import math

import jax
import jax.numpy as jnp
from jax.experimental import pallas as pl
from jax.experimental.pallas import tpu as pltpu

D_MODEL = 768
N_HEAD = 8
HEAD_DIM = D_MODEL // N_HEAD          # 96
HEAD_PAD = 128                        # head dim padded to a full lane tile
CTX_PAD = N_HEAD * HEAD_PAD           # 1024
DIM_FF = 2048                         # nn.TransformerEncoderLayer default dim_feedforward
LN_EPS = 1e-5                         # nn.LayerNorm default eps
N_CLASSES = 2
OUT_PAD = 128                         # classifier columns padded for lane-dense stores
NEG_INF = -1e30


# ----------------------------------------------------------------------------
# small helpers
# ----------------------------------------------------------------------------
def _layer_norm(x, gamma, beta):
    mu = jnp.mean(x, axis=-1, keepdims=True)
    var = jnp.mean(jnp.square(x - mu), axis=-1, keepdims=True)
    return (x - mu) * jax.lax.rsqrt(var + LN_EPS) * gamma + beta


def _vmem_limit_bytes(args, out_bytes):
    """Right-sized scoped-VMEM claim: single invocation (no grid) -> one buffer per
    operand; 2x covers the f32 up-casts of bf16 weights used with f32 activations
    plus any compiler-side buffering, +8 MiB for intermediates / internal scratch."""
    in_bytes = sum(int(a.size) * a.dtype.itemsize for a in args)
    return int(2 * in_bytes + 2 * out_bytes) + (8 << 20)


# ----------------------------------------------------------------------------
# shared lane-dense dense-head kernel:  o = x @ W + b, W padded to 128 columns.
# f32 activations x bf16 weights (weight up-cast in VMEM; compute is negligible).
# used by fusion == 'concat' and fusion == 'linear'
# ----------------------------------------------------------------------------
def _dense_head_kernel(x_ref, w_ref, b_ref, o_ref):
    o_ref[...] = (jnp.dot(x_ref[...], w_ref[...].astype(jnp.float32),
                          preferred_element_type=jnp.float32) + b_ref[...])


def _dense_head_call(x, w, bias, rows):
    return pl.pallas_call(
        _dense_head_kernel,
        out_shape=jax.ShapeDtypeStruct((rows, OUT_PAD), jnp.float32),
        compiler_params=pltpu.CompilerParams(
            vmem_limit_bytes=_vmem_limit_bytes((x, w, bias), rows * OUT_PAD * 4)),
    )(x, w, bias)


# ----------------------------------------------------------------------------
# one-time parameter preprocessing (hoisted out of the per-call path)
# ----------------------------------------------------------------------------
def prepare_concat_params(p):
    # pad the 2-wide classifier to 128 lanes (lane-dense stores), bf16 weight
    w = jnp.pad(p["w_o"], ((0, 0), (0, OUT_PAD - N_CLASSES))).astype(jnp.bfloat16)
    b = jnp.pad(p["b_o"], ((0, 0), (0, OUT_PAD - N_CLASSES)))
    return {"w": w, "b": b}


def prepare_linear_params(p, n_passages):
    # exact fold of linear_o ∘ linear_f into one (768*P -> 2) affine map so the
    # kernel keeps 768*P on the lane axis:
    #   out[b,c] = sum_{d,p} y[b, d*P+p] * w_f[p] * W_o[d,c]
    #              + b_f * sum_d W_o[d,c] + b_o[c],   y = pooled.view(-1, 768*P)
    w_eff = (p["w_f"][0][None, :, None] * p["w_o"][:, None, :]).reshape(
        D_MODEL * n_passages, N_CLASSES)
    b_eff = p["b_f"][0, 0] * jnp.sum(p["w_o"], axis=0) + p["b_o"][0]
    w = jnp.pad(w_eff, ((0, 0), (0, OUT_PAD - N_CLASSES))).astype(jnp.bfloat16)
    b = jnp.pad(b_eff[None, :], ((0, 0), (0, OUT_PAD - N_CLASSES)))
    return {"w": w, "b": b}


def prepare_attention_params(p):
    # pad head dim 96 -> 128 in the in/out projections so every in-kernel head
    # slice is a 128-lane-aligned slice (zero pads are exact). Split the joint
    # in_proj into a Q part (CLS rows only) and a KV part (all rows). bf16 weights.
    pad = HEAD_PAD - HEAD_DIM
    in_w = p["in_w"].reshape(D_MODEL, 3, N_HEAD, HEAD_DIM)
    in_w = jnp.pad(in_w, ((0, 0), (0, 0), (0, 0), (0, pad)))         # (768,3,8,128)
    in_b = p["in_b"].reshape(1, 3, N_HEAD, HEAD_DIM)
    in_b = jnp.pad(in_b, ((0, 0), (0, 0), (0, 0), (0, pad)))
    w_q = in_w[:, 0].reshape(D_MODEL, CTX_PAD).astype(jnp.bfloat16)
    b_q = in_b[:, 0].reshape(1, CTX_PAD)
    w_kv = in_w[:, 1:].reshape(D_MODEL, 2 * CTX_PAD).astype(jnp.bfloat16)
    b_kv = in_b[:, 1:].reshape(1, 2 * CTX_PAD)

    out_w = p["out_w"].reshape(N_HEAD, HEAD_DIM, D_MODEL)
    out_w = jnp.pad(out_w, ((0, 0), (0, pad), (0, 0)))
    out_w = out_w.reshape(CTX_PAD, D_MODEL).astype(jnp.bfloat16)

    return {
        "w_q": w_q, "b_q": b_q, "w_kv": w_kv, "b_kv": b_kv,
        "out_w": out_w, "out_b": p["out_b"],
        "ln1_g": p["ln1_g"], "ln1_b": p["ln1_b"],
        "ff1_w": p["ff1_w"].astype(jnp.bfloat16), "ff1_b": p["ff1_b"],
        "ff2_w": p["ff2_w"].astype(jnp.bfloat16), "ff2_b": p["ff2_b"],
        "ln2_g": p["ln2_g"], "ln2_b": p["ln2_b"],
        "w_o": jnp.pad(p["w_o"], ((0, 0), (0, OUT_PAD - N_CLASSES))).astype(jnp.bfloat16),
        "b_o": jnp.pad(p["b_o"], ((0, 0), (0, OUT_PAD - N_CLASSES))),
    }


# ----------------------------------------------------------------------------
# fusion == 'concat' :  linear_o(pooled.view(-1, 768 * n_passages))
# ----------------------------------------------------------------------------
def make_fusion_concat(n_passages):
    @jax.jit
    def run(pooled, prep):
        b = pooled.shape[0] // n_passages
        x = pooled.reshape(b, D_MODEL * n_passages)
        out = _dense_head_call(x, prep["w"], prep["b"], b)
        return out[:, :N_CLASSES]
    return run


# ----------------------------------------------------------------------------
# fusion == 'linear' : linear_o(linear_f(pooled.view(-1, 768, n_passages)).view(-1, 768))
# (parameters pre-folded in prepare_linear_params; same kernel as 'concat')
# ----------------------------------------------------------------------------
def make_fusion_linear(n_passages):
    @jax.jit
    def run(pooled, prep):
        b = pooled.shape[0] // n_passages
        y = pooled.reshape(b, D_MODEL * n_passages)
        out = _dense_head_call(y, prep["w"], prep["b"], b)
        return out[:, :N_CLASSES]
    return run


# ----------------------------------------------------------------------------
# fusion == 'attention' : linear_o(TransformerEncoderLayer(pooled)[:, 0, :])
# pooled is interpreted as (batch, n_passages, 768) — each passage is a token.
# Post-norm layer: x1 = LN1(x + MHA(x)); x2 = LN2(x1 + FFN(x1)), relu activation.
# Only output[:, 0, :] is consumed: K/V are computed for all tokens (flat layout),
# Q and the whole post-attention tail only for the CLS row of each batch element.
# ----------------------------------------------------------------------------
def _attention_fusion_kernel(xf_ref, xc_ref, wq_ref, bq_ref, wkv_ref, bkv_ref,
                             ow_ref, ob_ref, ln1g_ref, ln1b_ref,
                             ff1w_ref, ff1b_ref, ff2w_ref, ff2b_ref,
                             ln2g_ref, ln2b_ref, wo_ref, bo_ref, o_ref,
                             *, batch, seq):
    n_tok = batch * seq
    xf = xf_ref[...]                                   # (B*S, 768) f32, all tokens
    xc = xc_ref[...]                                   # (B, 768)   f32, CLS rows

    # big-weight projections: bf16 activations x bf16 weights, f32 accumulation.
    kv = jnp.dot(xf.astype(jnp.bfloat16), wkv_ref[...],
                 preferred_element_type=jnp.float32) + bkv_ref[...]   # (B*S, 2048)
    q = jnp.dot(xc.astype(jnp.bfloat16), wq_ref[...],
                preferred_element_type=jnp.float32) + bq_ref[...]     # (B, 1024)
    k = kv[:, :CTX_PAD]                                # (B*S, 1024)
    v = kv[:, CTX_PAD:]                                # (B*S, 1024)

    # block-diagonal mask over the flat key axis: CLS query of batch element b
    # attends only to that element's n_passages tokens (rows [b*S, (b+1)*S)).
    bi = jax.lax.broadcasted_iota(jnp.int32, (batch, n_tok), 0)
    kj = jax.lax.broadcasted_iota(jnp.int32, (batch, n_tok), 1)
    valid = (kj >= bi * seq) & (kj < (bi + 1) * seq)

    scale = 1.0 / math.sqrt(HEAD_DIM)
    dn_qkT = (((1,), (1,)), ((), ()))                  # contract last dims (q @ k^T)
    ctx_heads = []
    for h in range(N_HEAD):                            # 128-lane-aligned head slices
        lo = h * HEAD_PAD
        qh = q[:, lo:lo + HEAD_PAD]                    # (B, 128)
        kh = k[:, lo:lo + HEAD_PAD]                    # (B*S, 128)
        vh = v[:, lo:lo + HEAD_PAD]                    # (B*S, 128)
        s = jax.lax.dot_general(qh, kh, dn_qkT,
                                preferred_element_type=jnp.float32) * scale  # (B, B*S)
        s = jnp.where(valid, s, NEG_INF)
        s = s - jnp.max(s, axis=-1, keepdims=True)     # stable softmax, f32
        pr = jnp.exp(s)
        pr = pr / jnp.sum(pr, axis=-1, keepdims=True)  # exact reciprocal (accuracy)
        ctx_heads.append(jnp.dot(pr, vh, preferred_element_type=jnp.float32))
    ctx = jnp.concatenate(ctx_heads, axis=-1)          # (B, 1024), 128-aligned concat

    # CLS-row tail in f32 activations: out_proj -> LN1 -> FFN -> LN2 -> classifier.
    attn0 = jnp.dot(ctx, ow_ref[...].astype(jnp.float32),
                    preferred_element_type=jnp.float32) + ob_ref[...]       # (B, 768)
    x1 = _layer_norm(xc + attn0, ln1g_ref[...], ln1b_ref[...])

    h1 = jnp.maximum(jnp.dot(x1.astype(jnp.bfloat16), ff1w_ref[...],
                             preferred_element_type=jnp.float32) + ff1b_ref[...], 0.0)
    h2 = jnp.dot(h1.astype(jnp.bfloat16), ff2w_ref[...],
                 preferred_element_type=jnp.float32) + ff2b_ref[...]
    x2 = _layer_norm(x1 + h2, ln2g_ref[...], ln2b_ref[...])

    o_ref[...] = (jnp.dot(x2, wo_ref[...].astype(jnp.float32),
                          preferred_element_type=jnp.float32) + bo_ref[...])  # (B, 128)


def make_fusion_attention(n_passages):
    @jax.jit
    def run(pooled, prep):
        b = pooled.shape[0] // n_passages
        n_tok = b * n_passages
        x_cls = pooled[::n_passages]                   # (B, 768) CLS rows (wrapper-side)
        args = (pooled, x_cls,
                prep["w_q"], prep["b_q"], prep["w_kv"], prep["b_kv"],
                prep["out_w"], prep["out_b"], prep["ln1_g"], prep["ln1_b"],
                prep["ff1_w"], prep["ff1_b"], prep["ff2_w"], prep["ff2_b"],
                prep["ln2_g"], prep["ln2_b"], prep["w_o"], prep["b_o"])

        out_bytes = b * OUT_PAD * 4
        bytes_accessed = sum(int(a.size) * a.dtype.itemsize for a in args) + out_bytes
        flops = 2 * (n_tok * D_MODEL * 2 * CTX_PAD     # kv projection
                     + b * D_MODEL * CTX_PAD           # q projection (CLS rows)
                     + b * CTX_PAD * D_MODEL           # out_proj
                     + 2 * b * D_MODEL * DIM_FF        # FFN
                     + b * D_MODEL * OUT_PAD)          # classifier

        out = pl.pallas_call(
            functools.partial(_attention_fusion_kernel, batch=b, seq=n_passages),
            out_shape=jax.ShapeDtypeStruct((b, OUT_PAD), jnp.float32),
            compiler_params=pltpu.CompilerParams(
                vmem_limit_bytes=_vmem_limit_bytes(args, out_bytes)),
            cost_estimate=pl.CostEstimate(
                flops=int(flops),
                transcendentals=int(b * N_HEAD * n_tok + 4 * b),
                bytes_accessed=int(bytes_accessed)),
        )(*args)
        return out[:, :N_CLASSES]
    return run


# ----------------------------------------------------------------------------
# deterministic parameter init (shapes from __init__)
# ----------------------------------------------------------------------------
def init_params(key, n_passages):
    ks = jax.random.split(key, 20)
    std = 0.02

    def mat(k, *shape):
        return std * jax.random.normal(k, shape, jnp.float32)

    return {
        "concat": {
            "w_o": mat(ks[0], D_MODEL * n_passages, N_CLASSES),
            "b_o": mat(ks[1], 1, N_CLASSES),
        },
        "linear": {
            "w_f": jax.random.normal(ks[2], (1, n_passages), jnp.float32),
            "b_f": mat(ks[3], 1, 1),
            "w_o": mat(ks[4], D_MODEL, N_CLASSES),
            "b_o": mat(ks[5], 1, N_CLASSES),
        },
        "attention": {
            "in_w": mat(ks[6], D_MODEL, 3 * D_MODEL),
            "in_b": mat(ks[7], 1, 3 * D_MODEL),
            "out_w": mat(ks[8], D_MODEL, D_MODEL),
            "out_b": mat(ks[9], 1, D_MODEL),
            "ln1_g": 1.0 + mat(ks[10], 1, D_MODEL),
            "ln1_b": mat(ks[11], 1, D_MODEL),
            "ff1_w": mat(ks[12], D_MODEL, DIM_FF),
            "ff1_b": mat(ks[13], 1, DIM_FF),
            "ff2_w": mat(ks[14], DIM_FF, D_MODEL),
            "ff2_b": mat(ks[15], 1, D_MODEL),
            "ln2_g": 1.0 + mat(ks[16], 1, D_MODEL),
            "ln2_b": mat(ks[17], 1, D_MODEL),
            "w_o": mat(ks[18], D_MODEL, N_CLASSES),
            "b_o": mat(ks[19], 1, N_CLASSES),
        },
    }


# ----------------------------------------------------------------------------
# plain-JAX f32 references (faithful to the PyTorch forward; sanity checks)
# ----------------------------------------------------------------------------
def ref_concat(pooled, n_passages, p):
    b = pooled.shape[0] // n_passages
    x = pooled.reshape(b, D_MODEL * n_passages)
    return x @ p["w_o"] + p["b_o"]


def ref_linear(pooled, n_passages, p):
    b = pooled.shape[0] // n_passages
    x = pooled.reshape(b, D_MODEL, n_passages)
    h = jnp.sum(x * p["w_f"][:, None, :], axis=-1) + p["b_f"]
    return h @ p["w_o"] + p["b_o"]


def ref_attention(pooled, n_passages, p):
    b = pooled.shape[0] // n_passages
    x = pooled.reshape(b, n_passages, D_MODEL)
    qkv = x @ p["in_w"] + p["in_b"][0]
    q, k, v = jnp.split(qkv, 3, axis=-1)

    def heads(t):
        return t.reshape(b, n_passages, N_HEAD, HEAD_DIM).transpose(0, 2, 1, 3)

    qh, kh, vh = heads(q), heads(k), heads(v)
    s = jnp.einsum('bhqd,bhkd->bhqk', qh, kh) / math.sqrt(HEAD_DIM)
    pw = jax.nn.softmax(s, axis=-1)
    ctx = jnp.einsum('bhqk,bhkd->bhqd', pw, vh).transpose(0, 2, 1, 3)
    ctx = ctx.reshape(b, n_passages, D_MODEL)
    attn = ctx @ p["out_w"] + p["out_b"][0]

    def ln(t, g, be):
        mu = jnp.mean(t, -1, keepdims=True)
        var = jnp.mean((t - mu) ** 2, -1, keepdims=True)
        return (t - mu) / jnp.sqrt(var + LN_EPS) * g[0] + be[0]

    x1 = ln(x + attn, p["ln1_g"], p["ln1_b"])
    ff = jax.nn.relu(x1 @ p["ff1_w"] + p["ff1_b"][0]) @ p["ff2_w"] + p["ff2_b"][0]
    x2 = ln(x1 + ff, p["ln2_g"], p["ln2_b"])
    return x2[:, 0, :] @ p["w_o"] + p["b_o"]


if __name__ == "__main__":
    key = jax.random.PRNGKey(0)
    k_in, k_p = jax.random.split(key)

    batch = 2
    n_passages = 4
    pooled = jax.random.normal(k_in, (batch * n_passages, D_MODEL), jnp.float32)
    params = init_params(k_p, n_passages)

    # one-time parameter prep (pad / bf16 cast / fold) — hoisted out of the
    # per-call path; these padded-bf16 tensors are "the stored parameters".
    prep = {
        "concat": prepare_concat_params(params["concat"]),
        "linear": prepare_linear_params(params["linear"], n_passages),
        "attention": prepare_attention_params(params["attention"]),
    }
    jax.block_until_ready(prep)

    run_concat = make_fusion_concat(n_passages)
    run_linear = make_fusion_linear(n_passages)
    run_attention = make_fusion_attention(n_passages)

    outs = {
        "concat": run_concat(pooled, prep["concat"]),
        "linear": run_linear(pooled, prep["linear"]),
        "attention": run_attention(pooled, prep["attention"]),
    }
    jax.block_until_ready(outs)

    refs = {
        "concat": ref_concat(pooled, n_passages, params["concat"]),
        "linear": ref_linear(pooled, n_passages, params["linear"]),
        "attention": ref_attention(pooled, n_passages, params["attention"]),
    }
    for name, out in outs.items():
        assert out.shape == (batch, N_CLASSES), (name, out.shape)
        assert bool(jnp.all(jnp.isfinite(out))), name
        # bf16 weights (and bf16 activations on the big projections) vs f32 ref
        assert bool(jnp.allclose(out, refs[name], atol=5e-2, rtol=5e-2)), name

    print("KERNEL_OK")
</pallas_src>

<mosaic_0001>
module attributes {stable_mosaic.version = 11 : i64} {
  func.func @_dense_head_kernel(%arg0: memref<2x3072xf32, #tpu.memory_space<vmem>>, %arg1: memref<3072x128xbf16, #tpu.memory_space<vmem>>, %arg2: memref<1x128xf32, #tpu.memory_space<vmem>>, %arg3: memref<2x128xf32, #tpu.memory_space<vmem>>) attributes {dimension_semantics = [], scalar_prefetch = 0 : i64, scratch_operands = 0 : i64, tpu.core_type = #tpu.core_type<tc>} {
    %c0 = arith.constant 0 : index
    %c0_0 = arith.constant 0 : index
    %0 = vector.load %arg0[%c0, %c0_0] : memref<2x3072xf32, #tpu.memory_space<vmem>>, vector<2x3072xf32>
    %c0_1 = arith.constant 0 : index
    %c0_2 = arith.constant 0 : index
    %1 = vector.load %arg1[%c0_1, %c0_2] : memref<3072x128xbf16, #tpu.memory_space<vmem>>, vector<3072x128xbf16>
    %2 = arith.extf %1 : vector<3072x128xbf16> to vector<3072x128xf32>
    %cst = arith.constant dense<0.000000e+00> : vector<2x128xf32>
    %3 = tpu.matmul %0, %2, %cst {dimension_numbers = #tpu.dot_dimension_numbers<[1], [0], [0], [1], [0, 0, 1, 1], [], []>} : vector<2x3072xf32>, vector<3072x128xf32>, vector<2x128xf32> -> vector<2x128xf32>
    %c0_3 = arith.constant 0 : index
    %c0_4 = arith.constant 0 : index
    %4 = vector.load %arg2[%c0_3, %c0_4] : memref<1x128xf32, #tpu.memory_space<vmem>>, vector<1x128xf32>
    %5 = vector.broadcast %4 : vector<1x128xf32> to vector<2x128xf32>
    %6 = arith.addf %3, %5 : vector<2x128xf32>
    %c0_5 = arith.constant 0 : index
    %c0_6 = arith.constant 0 : index
    %7 = vector.load %arg3[%c0_5, %c0_6] : memref<2x128xf32, #tpu.memory_space<vmem>>, vector<2x128xf32>
    tpu.vector_store %arg3[%c0_5, %c0_6], %6 {strides = array<i32>} : memref<2x128xf32, #tpu.memory_space<vmem>>, vector<2x128xf32>,
    return
  }
}

</mosaic_0001>

<bundles_post_ra>
// kernel: run.1
= control target key start
LH: loop header
LB: loop body
LE: loop exit
PB: predicated region body
PF: predicated region fallthrough
CT: control target
= control target key end

     0   :  { %8 = vsyncpa [#allocation3], 0  ;;  %s3755_s0 = inlined_call_operand.vmem [shape: f32[2,3072], index: 0, kind: input, shape index: {}]   ;;  %s3756_s1 = inlined_call_operand.hbm [shape: bf16[3072,128], index: 1, kind: input, shape index: {}]   ;;  %s3757_s2 = inlined_call_operand.vmem [shape: f32[1,128], index: 2, kind: input, shape index: {}]   ;;  %s3758_s3 = inlined_call_operand.hbm [shape: f32[2,128], index: 3, kind: output, shape index: {}]  }
   0x1   :  { %9 = vsyncpa [#allocation4], 0  ;;  %s3621_s12 = smov [#allocation2]   ;;  %s3573_s16 = scalar_lea.hbm %s3756_s1, 24576 }
   0x2   :  { %s17_s13 = sshll.u32 %s3621_s12, 4  ;;  %p3574_p0 = scmp.ne.s32.totalorder %s3756_s1, %s3573_s16  ;;  %s18_s13 = int_to_ptr.vmem [resolvable:$true] %s17_s13 }
   0x3   :  { %p3577_p1 = scmp.lt.u32.totalorder %s3573_s16, %s3756_s1 }
   0x5   :  { %p3579_p2 = pnand %p3577_p1, %p3574_p0 }
   0x7   :  { %3582 = shalt.err (!%p3579_p2)
}
   0x8   :  { %s3583_s21 = scalar_lea.vmem %s18_s13, 24576  ;;  %p3588_p4 = scmp.lt.s32.totalorder %s18_s13, %s18_s13 }
   0x9   :  { %p3584_p3 = scmp.ne.s32.totalorder %s18_s13, %s3583_s21  ;;  %p3589_p5 = scmp.lt.s32.totalorder %s3583_s21, %s3583_s21 }
   0xb   :  { %p3590_p6 = por %p3589_p5, %p3588_p4 }
   0xd   :  { %p3591_p7 = pnand %p3590_p6, %p3584_p3 }
   0xf   :  { %3594 = shalt.err (!%p3591_p7)
}
  0x10   :  { %s3622_s22 = smov 64   ;;  %s3623_s23 = smov 4  }
  0x11   :  { %23 = dma.hbm_to_vmem [thread:$0]  %s3756_s1, 24576, %s18_s13, [#allocation3], %s3622_s22, %s3622_s22, %s3623_s23  }
  0x12   :  { %3617 = dma.done.wait [#allocation3], 24576  }
  0x13   :  { %3618 = vsyncadd [#allocation3], 4294942720  ;;  %v3624_v0 = vmov 1983009808   ;;  %v820_v2 = vlaneseq  ;;  %v2574_v3 = vld [vmem:[#allocation2 + $0x40] sm:$0xff]   ;;  %v2575_v7 = vld [vmem:[#allocation2 + $0x48] sm:$0xff]  }
  0x14   :  { %v818_v1 = vunpack.c.l.s4 %v3624_v0  ;;  %v1800_v4 = vld [vmem:[#allocation2] sm:$0xff]   ;;  %3179 = vmatprep.subr.bf16.mxu0 %v2574_v3  ;;  %v2591_v8 = vld [vmem:[#allocation2 + $0xc8] sm:$0xff]   ;;  %v2576_v13 = vld [vmem:[#allocation2 + $0x50] sm:$0xff]  }
  0x15   :  { %v2590_v5 = vld [vmem:[#allocation2 + $0xc0] sm:$0xff]   ;;  %3181 = vmatpush3.bf16.msra.mxu0 %v1800_v4  ;;  %v2567_v9 = vld [vmem:[#allocation2 + $0x8] sm:$0xff]   ;;  %v821_v12 = vshrl.u32 %v820_v2, 7  ;;  %v2592_v14 = vld [vmem:[#allocation2 + $0xd0] sm:$0xff]  }
  0x16   :  { %3211 = vmatprep.subr.bf16.mxu1 %v2590_v5  ;;  %v2582_v6 = vld [vmem:[#allocation2 + $0x80] sm:$0xff]   ;;  %3183 = vmatprep.subr.bf16.mxu0 %v2575_v7  ;;  %v2583_v10 = vld [vmem:[#allocation2 + $0x88] sm:$0xff]   ;;  %v819_v11 = vunpack.c.0.s8 %v818_v1  ;;  %v2568_v15 = vld [vmem:[#allocation2 + $0x10] sm:$0xff]  }
  0x17   :  { %3213 = vmatpush3.bf16.msra.mxu1 %v2582_v6  ;;  %v2584_v16 = vld [vmem:[#allocation2 + $0x90] sm:$0xff]   ;;  %v2577_v18 = vld [vmem:[#allocation2 + $0x58] sm:$0xff]   ;;  %v29_v20 = vld [vmem:[%s3755_s0] sm:$0xff] }
  0x18   :  { %3215 = vmatprep.subr.bf16.mxu1 %v2591_v8  ;;  %v3658_v17 = vsub.s32 %v819_v11, %v821_v12  ;;  %v2593_v19 = vld [vmem:[#allocation2 + $0xd8] sm:$0xff]   ;;  %v816_v24 = vcombine.high %v29_v20, %v29_v20  ;;  %v2578_v25 = vld [vmem:[#allocation2 + $0x60] sm:$0xff]   ;;  %v2579_v32 = vld [vmem:[#allocation2 + $0x68] sm:$0xff]  }
  0x19   :  { %3185 = vmatpush3.bf16.msra.mxu0 %v2567_v9  ;;  %v2569_v21 = vld [vmem:[#allocation2 + $0x18] sm:$0xff]   ;;  %v2594_v26 = vld [vmem:[#allocation2 + $0xe0] sm:$0xff]   ;;  %v2595_v33 = vld [vmem:[#allocation2 + $0xe8] sm:$0xff]  }
  0x1a   :  { %3187 = vmatprep.subr.bf16.mxu0 %v2576_v13  ;;  %v2585_v22 = vld [vmem:[#allocation2 + $0x98] sm:$0xff]   ;;  %v823_v23 = vrot.slane %v29_v20, %v3658_v17  ;;  %v830_v28 = vrot.slane %v816_v24, %v3658_v17  ;;  %v2570_v29 = vld [vmem:[#allocation2 + $0x20] sm:$0xff]   ;;  %v2571_v34 = vld [vmem:[#allocation2 + $0x28] sm:$0xff]  }
  0x1b   :  { %3217 = vmatpush3.bf16.msra.mxu1 %v2583_v10  ;;  %v2586_v30 = vld [vmem:[#allocation2 + $0xa0] sm:$0xff]   ;;  %v2587_v35 = vld [vmem:[#allocation2 + $0xa8] sm:$0xff]   ;;  %v2580_v36 = vld [vmem:[#allocation2 + $0x70] sm:$0xff]  }
  0x1c   :  { %3219 = vmatprep.subr.bf16.mxu1 %v2592_v14  ;;  %v831_v27 = vcombine.high %v823_v23, %v823_v23  ;;  %v832_v31 = vcombine.high %v830_v28, %v830_v28  ;;  %v2596_v37 = vld [vmem:[#allocation2 + $0xf0] sm:$0xff]   ;;  %v30_v38 = vld [vmem:[%s3755_s0 + $0x8] sm:$0xff]  ;;  %v2581_v41 = vld [vmem:[#allocation2 + $0x78] sm:$0xff]  }
  0x1d   :  { %3189 = vmatpush3.bf16.msra.mxu0 %v2568_v15  ;;  %v2572_v39 = vld [vmem:[#allocation2 + $0x30] sm:$0xff]   ;;  %v2597_v42 = vld [vmem:[#allocation2 + $0xf8] sm:$0xff]   ;;  %v833_v43 = vcombine.high %v30_v38, %v30_v38  ;;  %v2606_v46 = vld [vmem:[#allocation2 + $0x140] sm:$0xff]   ;;  %v3669_v48 = vrot.slane %v30_v38, %v3658_v17 }
  0x1e   :  { %3191 = vmatprep.subr.bf16.mxu0 %v2577_v18  ;;  %1006 = vmatprep.mubr.f32.mxu0 %v831_v27  ;;  %v2588_v40 = vld [vmem:[#allocation2 + $0xb0] sm:$0xff]   ;;  %v2573_v44 = vld [vmem:[#allocation2 + $0x38] sm:$0xff]   ;;  %v2622_v47 = vld [vmem:[#allocation2 + $0x1c0] sm:$0xff]  }
  0x1f   :  { %3221 = vmatpush3.bf16.msra.mxu1 %v2584_v16  ;;  %1076 = vmatprep.mubr.f32.mxu1 %v832_v31  ;;  %v2589_v45 = vld [vmem:[#allocation2 + $0xb8] sm:$0xff]   ;;  %v3672_v49 = vrot.slane %v833_v43, %v3658_v17  ;;  %v2598_v50 = vld [vmem:[#allocation2 + $0x100] sm:$0xff]   ;;  %v2607_v52 = vld [vmem:[#allocation2 + $0x148] sm:$0xff]   ;;  %v848_v54 = vcombine.high %v3669_v48, %v3669_v48 }
  0x20   :  { %3223 = vmatprep.subr.bf16.mxu1 %v2593_v19  ;;  %v2614_v51 = vld [vmem:[#allocation2 + $0x180] sm:$0xff]   ;;  %v2623_v53 = vld [vmem:[#allocation2 + $0x1c8] sm:$0xff]   ;;  %v2608_v58 = vld [vmem:[#allocation2 + $0x150] sm:$0xff]  }
  0x21   :  { %3193 = vmatpush3.bf16.msra.mxu0 %v2569_v21  ;;  %v849_v55 = vcombine.high %v3672_v49, %v3672_v49  ;;  %v2599_v56 = vld [vmem:[#allocation2 + $0x108] sm:$0xff]   ;;  %v2624_v59 = vld [vmem:[#allocation2 + $0x1d0] sm:$0xff]   ;;  %v2609_v62 = vld [vmem:[#allocation2 + $0x158] sm:$0xff]  }
  0x22   :  { %3195 = vmatprep.subr.bf16.mxu0 %v2578_v25  ;;  %v2615_v57 = vld [vmem:[#allocation2 + $0x188] sm:$0xff]   ;;  %v2600_v60 = vld [vmem:[#allocation2 + $0x110] sm:$0xff]   ;;  %v2625_v63 = vld [vmem:[#allocation2 + $0x1d8] sm:$0xff]  }
  0x23   :  { %3225 = vmatpush3.bf16.msra.mxu1 %v2585_v22  ;;  %v2616_v61 = vld [vmem:[#allocation2 + $0x190] sm:$0xff]   ;;  %v2601_v0 = vld [vmem:[#allocation2 + $0x118] sm:$0xff]   ;;  %v2610_v2 = vld [vmem:[#allocation2 + $0x160] sm:$0xff]  }
  0x24   :  { %3227 = vmatprep.subr.bf16.mxu1 %v2594_v26  ;;  %v2617_v1 = vld [vmem:[#allocation2 + $0x198] sm:$0xff]   ;;  %v2626_v3 = vld [vmem:[#allocation2 + $0x1e0] sm:$0xff]   ;;  %v2611_v6 = vld [vmem:[#allocation2 + $0x168] sm:$0xff]  }
  0x25   :  { %3197 = vmatpush3.bf16.msra.mxu0 %v2570_v29  ;;  %v2602_v4 = vld [vmem:[#allocation2 + $0x120] sm:$0xff]   ;;  %v2627_v7 = vld [vmem:[#allocation2 + $0x1e8] sm:$0xff]   ;;  %v2612_v10 = vld [vmem:[#allocation2 + $0x170] sm:$0xff]  }
  0x26   :  { %3199 = vmatprep.subr.bf16.mxu0 %v2579_v32  ;;  %v2618_v5 = vld [vmem:[#allocation2 + $0x1a0] sm:$0xff]   ;;  %v2603_v8 = vld [vmem:[#allocation2 + $0x128] sm:$0xff]   ;;  %v2628_v11 = vld [vmem:[#allocation2 + $0x1f0] sm:$0xff]  }
  0x27   :  { %3229 = vmatpush3.bf16.msra.mxu1 %v2586_v30  ;;  %v2619_v9 = vld [vmem:[#allocation2 + $0x1a8] sm:$0xff]   ;;  %v31_v12 = vld [vmem:[%s3755_s0 + $0x10] sm:$0xff]  ;;  %v2613_v15 = vld [vmem:[#allocation2 + $0x178] sm:$0xff]  }
  0x28   :  { %3231 = vmatprep.subr.bf16.mxu1 %v2595_v33  ;;  %v2604_v13 = vld [vmem:[#allocation2 + $0x130] sm:$0xff]   ;;  %v2629_v16 = vld [vmem:[#allocation2 + $0x1f8] sm:$0xff]   ;;  %v850_v18 = vcombine.high %v31_v12, %v31_v12  ;;  %v2638_v21 = vld [vmem:[#allocation2 + $0x240] sm:$0xff]  }
  0x29   :  { %3201 = vmatpush3.bf16.msra.mxu0 %v2571_v34  ;;  %v2620_v14 = vld [vmem:[#allocation2 + $0x1b0] sm:$0xff]   ;;  %v2605_v19 = vld [vmem:[#allocation2 + $0x138] sm:$0xff]   ;;  %v2654_v22 = vld [vmem:[#allocation2 + $0x2c0] sm:$0xff]  }
  0x2a   :  { %3203 = vmatprep.subr.bf16.mxu0 %v2580_v36  ;;  %v2621_v20 = vld [vmem:[#allocation2 + $0x1b8] sm:$0xff]   ;;  %v3685_v24 = vrot.slane %v850_v18, %v3658_v17  ;;  %v2630_v25 = vld [vmem:[#allocation2 + $0x200] sm:$0xff]   ;;  %v2639_v27 = vld [vmem:[#allocation2 + $0x248] sm:$0xff]  }
  0x2b   :  { %3233 = vmatpush3.bf16.msra.mxu1 %v2587_v35  ;;  %v2646_v26 = vld [vmem:[#allocation2 + $0x280] sm:$0xff]   ;;  %v2631_v31 = vld [vmem:[#allocation2 + $0x208] sm:$0xff]   ;;  %v2640_v33 = vld [vmem:[#allocation2 + $0x250] sm:$0xff]  }
  0x2c   :  { %3235 = vmatprep.subr.bf16.mxu1 %v2596_v37  ;;  %v866_v30 = vcombine.high %v3685_v24, %v3685_v24  ;;  %v2647_v32 = vld [vmem:[#allocation2 + $0x288] sm:$0xff]   ;;  %v2656_v34 = vld [vmem:[#allocation2 + $0x2d0] sm:$0xff]   ;;  %v2641_v37 = vld [vmem:[#allocation2 + $0x258] sm:$0xff]  }
  0x2d   :  { %3205 = vmatpush3.bf16.msra.mxu0 %v2572_v39  ;;  %v2632_v35 = vld [vmem:[#allocation2 + $0x210] sm:$0xff]   ;;  %v2657_v38 = vld [vmem:[#allocation2 + $0x2d8] sm:$0xff]   ;;  %v2634_v43 = vld [vmem:[#allocation2 + $0x220] sm:$0xff]  }
  0x2e   :  { %3207 = vmatprep.subr.bf16.mxu0 %v2581_v41  ;;  %v2648_v36 = vld [vmem:[#allocation2 + $0x290] sm:$0xff]   ;;  %v2633_v39 = vld [vmem:[#allocation2 + $0x218] sm:$0xff]   ;;  %v2642_v41 = vld [vmem:[#allocation2 + $0x260] sm:$0xff]  }
  0x2f   :  { %3237 = vmatpush3.bf16.msra.mxu1 %v2588_v40  ;;  %v2649_v40 = vld [vmem:[#allocation2 + $0x298] sm:$0xff]   ;;  %v2666_v18 = vld [vmem:[#allocation2 + $0x320] sm:$0xff]  }
  0x30   :  { %3239 = vmatprep.subr.bf16.mxu1 %v2597_v42  ;;  %v2658_v42 = vld [vmem:[#allocation2 + $0x2e0] sm:$0xff]  }
  0x31   :  { %3209 = vmatpush3.bf16.msra.mxu0 %v2573_v44  ;;  %v2650_v44 = vld [vmem:[#allocation2 + $0x2a0] sm:$0xff]  }
  0x32   :  { %3243 = vmatprep.subr.bf16.mxu0 %v2606_v46  ;;  %v2659_v46 = vld [vmem:[#allocation2 + $0x2e8] sm:$0xff]  }
  0x33   :  { %3241 = vmatpush3.bf16.msra.mxu1 %v2589_v45  ;;  %v2643_v45 = vld [vmem:[#allocation2 + $0x268] sm:$0xff]  }
  0x34   :  { %3275 = vmatprep.subr.bf16.mxu1 %v2622_v47  ;;  %1007 = vmatmul.mubr.f32.vlgmr.msra.gmra.mrb[0].mxu0 %v823_v23  ;;  %v3682_v23 = vrot.slane %v31_v12, %v3658_v17  ;;  %v2635_v47 = vld [vmem:[#allocation2 + $0x228] sm:$0xff]   ;;  %v2689_v12 = vld [vmem:[#allocation2 + $0x3d8] sm:$0xff]  }
  0x35   :  { %3245 = vmatpush3.bf16.msra.mxu0 %v2598_v50  ;;  %1146 = vmatprep.mubr.f32.mxu0 %v848_v54  ;;  %v2660_v50 = vld [vmem:[#allocation2 + $0x2f0] sm:$0xff]   ;;  %v2645_v54 = vld [vmem:[#allocation2 + $0x278] sm:$0xff]  }
  0x36   :  { %1077 = vmatmul.mubr.f32.vlgmr.msra.gmra.mrb[0].mxu1 %v830_v28  ;;  %3247 = vmatprep.subr.bf16.mxu0 %v2607_v52  ;;  %v2655_v28 = vld [vmem:[#allocation2 + $0x2c8] sm:$0xff]   ;;  %v865_v29 = vcombine.high %v3682_v23, %v3682_v23  ;;  %v2636_v52 = vld [vmem:[#allocation2 + $0x230] sm:$0xff]  }
  0x37   :  { %3277 = vmatpush3.bf16.msra.mxu1 %v2614_v51  ;;  %1216 = vmatprep.mubr.f32.mxu1 %v849_v55  ;;  %v32_v51 = vld [vmem:[%s3755_s0 + $0x18] sm:$0xff] }
  0x38   :  { %3279 = vmatprep.subr.bf16.mxu1 %v2623_v53  ;;  %v2652_v53 = vld [vmem:[#allocation2 + $0x2b0] sm:$0xff]   ;;  %v2661_v55 = vld [vmem:[#allocation2 + $0x2f8] sm:$0xff]  }
  0x39   :  { %3249 = vmatpush3.bf16.msra.mxu0 %v2599_v56  ;;  %v867_v56 = vcombine.high %v32_v51, %v32_v51 }
  0x3a   :  { %3251 = vmatprep.subr.bf16.mxu0 %v2608_v58  ;;  %v2653_v58 = vld [vmem:[#allocation2 + $0x2b8] sm:$0xff]  }
  0x3b   :  { %3281 = vmatpush3.bf16.msra.mxu1 %v2615_v57  ;;  %v2637_v57 = vld [vmem:[#allocation2 + $0x238] sm:$0xff]  }
  0x3c   :  { %3283 = vmatprep.subr.bf16.mxu1 %v2624_v59  ;;  %v2670_v59 = vld [vmem:[#allocation2 + $0x340] sm:$0xff]  }
  0x3d   :  { %3253 = vmatpush3.bf16.msra.mxu0 %v2600_v60  ;;  %v2686_v60 = vld [vmem:[#allocation2 + $0x3c0] sm:$0xff]  }
  0x3e   :  { %3255 = vmatprep.subr.bf16.mxu0 %v2609_v62  ;;  %v3700_v62 = vrot.slane %v867_v56, %v3658_v17  ;;  %v2698_v56 = vld [vmem:[#allocation2 + $0x420] sm:$0xff]  }
  0x3f   :  { %3285 = vmatpush3.bf16.msra.mxu1 %v2616_v61  ;;  %v3697_v61 = vrot.slane %v32_v51, %v3658_v17  ;;  %v2721_v51 = vld [vmem:[#allocation2 + $0x4d8] sm:$0xff]  }
  0x40   :  { %3287 = vmatprep.subr.bf16.mxu1 %v2625_v63  ;;  %v2662_v63 = vld [vmem:[#allocation2 + $0x300] sm:$0xff]  }
  0x41   :  { %3257 = vmatpush3.bf16.msra.mxu0 %v2601_v0  ;;  %v2678_v0 = vld [vmem:[#allocation2 + $0x380] sm:$0xff]  }
  0x42   :  { %3259 = vmatprep.subr.bf16.mxu0 %v2610_v2  ;;  %v2687_v2 = vld [vmem:[#allocation2 + $0x3c8] sm:$0xff]  }
  0x43   :  { %3289 = vmatpush3.bf16.msra.mxu1 %v2617_v1  ;;  %v2671_v1 = vld [vmem:[#allocation2 + $0x348] sm:$0xff]  }
  0x44   :  { %3291 = vmatprep.subr.bf16.mxu1 %v2626_v3  ;;  %v882_v3 = vcombine.high %v3697_v61, %v3697_v61 }
  0x45   :  { %3261 = vmatpush3.bf16.msra.mxu0 %v2602_v4  ;;  %v883_v4 = vcombine.high %v3700_v62, %v3700_v62 }
  0x46   :  { %3263 = vmatprep.subr.bf16.mxu0 %v2611_v6  ;;  %v2679_v6 = vld [vmem:[#allocation2 + $0x388] sm:$0xff]  }
  0x47   :  { %3293 = vmatpush3.bf16.msra.mxu1 %v2618_v5  ;;  %v2663_v5 = vld [vmem:[#allocation2 + $0x308] sm:$0xff]  }
  0x48   :  { %3295 = vmatprep.subr.bf16.mxu1 %v2627_v7  ;;  %v2672_v7 = vld [vmem:[#allocation2 + $0x350] sm:$0xff]  }
  0x49   :  { %3265 = vmatpush3.bf16.msra.mxu0 %v2603_v8  ;;  %v2688_v8 = vld [vmem:[#allocation2 + $0x3d0] sm:$0xff]  }
  0x4a   :  { %3267 = vmatprep.subr.bf16.mxu0 %v2612_v10  ;;  %v2680_v10 = vld [vmem:[#allocation2 + $0x390] sm:$0xff]  }
  0x4b   :  { %3297 = vmatpush3.bf16.msra.mxu1 %v2619_v9  ;;  %v2664_v9 = vld [vmem:[#allocation2 + $0x310] sm:$0xff]  }
  0x4c   :  { %3299 = vmatprep.subr.bf16.mxu1 %v2628_v11  ;;  %v2673_v11 = vld [vmem:[#allocation2 + $0x358] sm:$0xff]  }
  0x4d   :  { %3269 = vmatpush3.bf16.msra.mxu0 %v2604_v13  ;;  %v2665_v13 = vld [vmem:[#allocation2 + $0x318] sm:$0xff]  }
  0x4e   :  { %3271 = vmatprep.subr.bf16.mxu0 %v2613_v15  ;;  %v2674_v15 = vld [vmem:[#allocation2 + $0x360] sm:$0xff]  }
  0x4f   :  { %3301 = vmatpush3.bf16.msra.mxu1 %v2620_v14  ;;  %v2681_v14 = vld [vmem:[#allocation2 + $0x398] sm:$0xff]  }
  0x50   :  { %3303 = vmatprep.subr.bf16.mxu1 %v2629_v16  ;;  %v2690_v16 = vld [vmem:[#allocation2 + $0x3e0] sm:$0xff]  }
  0x51   :  { %3273 = vmatpush3.bf16.msra.mxu0 %v2605_v19  ;;  %v2682_v19 = vld [vmem:[#allocation2 + $0x3a0] sm:$0xff]  }
  0x52   :  { %3307 = vmatprep.subr.bf16.mxu0 %v2638_v21  ;;  %v2691_v21 = vld [vmem:[#allocation2 + $0x3e8] sm:$0xff]  }
  0x53   :  { %3305 = vmatpush3.bf16.msra.mxu1 %v2621_v20  ;;  %v2675_v20 = vld [vmem:[#allocation2 + $0x368] sm:$0xff]  }
  0x54   :  { %3339 = vmatprep.subr.bf16.mxu1 %v2654_v22  ;;  %1147 = vmatmul.mubr.f32.vlgmr.msra.gmra.mrb[2].mxu0 %v3669_v48  ;;  %v2651_v48 = vld [vmem:[#allocation2 + $0x2a8] sm:$0xff]  }
  0x55   :  { %3309 = vmatpush3.bf16.msra.mxu0 %v2630_v25  ;;  %1286 = vmatprep.mubr.f32.mxu0 %v865_v29  ;;  %v2667_v22 = vld [vmem:[#allocation2 + $0x328] sm:$0xff]   ;;  %v2692_v25 = vld [vmem:[#allocation2 + $0x3f0] sm:$0xff]   ;;  %v2677_v29 = vld [vmem:[#allocation2 + $0x378] sm:$0xff]  }
  0x56   :  { %1217 = vmatmul.mubr.f32.vlgmr.msra.gmra.mrb[2].mxu1 %v3672_v49  ;;  %3311 = vmatprep.subr.bf16.mxu0 %v2639_v27  ;;  %v2644_v49 = vld [vmem:[#allocation2 + $0x270] sm:$0xff]  }
  0x57   :  { %3341 = vmatpush3.bf16.msra.mxu1 %v2646_v26  ;;  %1356 = vmatprep.mubr.f32.mxu1 %v866_v30  ;;  %v33_v26 = vld [vmem:[%s3755_s0 + $0x20] sm:$0xff]  ;;  %v2668_v27 = vld [vmem:[#allocation2 + $0x330] sm:$0xff]   ;;  %v2693_v30 = vld [vmem:[#allocation2 + $0x3f8] sm:$0xff]  }
  0x58   :  { %3343 = vmatprep.subr.bf16.mxu1 %v2655_v28  ;;  %v2684_v28 = vld [vmem:[#allocation2 + $0x3b0] sm:$0xff]  }
  0x59   :  { %3313 = vmatpush3.bf16.msra.mxu0 %v2631_v31  ;;  %v884_v31 = vcombine.high %v33_v26, %v33_v26 }
  0x5a   :  { %3315 = vmatprep.subr.bf16.mxu0 %v2640_v33  ;;  %v2685_v33 = vld [vmem:[#allocation2 + $0x3b8] sm:$0xff]  }
  0x5b   :  { %3345 = vmatpush3.bf16.msra.mxu1 %v2647_v32  ;;  %v2669_v32 = vld [vmem:[#allocation2 + $0x338] sm:$0xff]  }
  0x5c   :  { %3347 = vmatprep.subr.bf16.mxu1 %v2656_v34  ;;  %v2702_v34 = vld [vmem:[#allocation2 + $0x440] sm:$0xff]  }
  0x5d   :  { %3317 = vmatpush3.bf16.msra.mxu0 %v2632_v35  ;;  %v2718_v35 = vld [vmem:[#allocation2 + $0x4c0] sm:$0xff]  }
  0x5e   :  { %3319 = vmatprep.subr.bf16.mxu0 %v2641_v37  ;;  %v3715_v37 = vrot.slane %v884_v31, %v3658_v17  ;;  %v2746_v31 = vld [vmem:[#allocation2 + $0x5a0] sm:$0xff]  }
  0x5f   :  { %3349 = vmatpush3.bf16.msra.mxu1 %v2648_v36  ;;  %v3712_v36 = vrot.slane %v33_v26, %v3658_v17  ;;  %v2729_v26 = vld [vmem:[#allocation2 + $0x518] sm:$0xff]  }
  0x60   :  { %3351 = vmatprep.subr.bf16.mxu1 %v2657_v38  ;;  %v2694_v38 = vld [vmem:[#allocation2 + $0x400] sm:$0xff]  }
  0x61   :  { %3321 = vmatpush3.bf16.msra.mxu0 %v2633_v39  ;;  %v2710_v39 = vld [vmem:[#allocation2 + $0x480] sm:$0xff]  }
  0x62   :  { %3323 = vmatprep.subr.bf16.mxu0 %v2642_v41  ;;  %v2719_v41 = vld [vmem:[#allocation2 + $0x4c8] sm:$0xff]  }
  0x63   :  { %3353 = vmatpush3.bf16.msra.mxu1 %v2649_v40  ;;  %v2703_v40 = vld [vmem:[#allocation2 + $0x448] sm:$0xff]  }
  0x64   :  { %3355 = vmatprep.subr.bf16.mxu1 %v2658_v42  ;;  %v899_v42 = vcombine.high %v3712_v36, %v3712_v36 }
  0x65   :  { %3325 = vmatpush3.bf16.msra.mxu0 %v2634_v43  ;;  %v900_v43 = vcombine.high %v3715_v37, %v3715_v37 }
  0x66   :  { %3327 = vmatprep.subr.bf16.mxu0 %v2643_v45  ;;  %v2711_v45 = vld [vmem:[#allocation2 + $0x488] sm:$0xff]  }
  0x67   :  { %3357 = vmatpush3.bf16.msra.mxu1 %v2650_v44  ;;  %v2695_v44 = vld [vmem:[#allocation2 + $0x408] sm:$0xff]  }
  0x68   :  { %3359 = vmatprep.subr.bf16.mxu1 %v2659_v46  ;;  %v2704_v46 = vld [vmem:[#allocation2 + $0x450] sm:$0xff]  }
  0x69   :  { %3329 = vmatpush3.bf16.msra.mxu0 %v2635_v47  ;;  %v2720_v47 = vld [vmem:[#allocation2 + $0x4d0] sm:$0xff]  }
  0x6a   :  { %3331 = vmatprep.subr.bf16.mxu0 %v2644_v49  ;;  %v2712_v49 = vld [vmem:[#allocation2 + $0x490] sm:$0xff]  }
  0x6b   :  { %3361 = vmatpush3.bf16.msra.mxu1 %v2651_v48  ;;  %v2696_v48 = vld [vmem:[#allocation2 + $0x410] sm:$0xff]  }
  0x6c   :  { %3363 = vmatprep.subr.bf16.mxu1 %v2660_v50  ;;  %v2705_v50 = vld [vmem:[#allocation2 + $0x458] sm:$0xff]  }
  0x6d   :  { %3333 = vmatpush3.bf16.msra.mxu0 %v2636_v52  ;;  %v2697_v52 = vld [vmem:[#allocation2 + $0x418] sm:$0xff]  }
  0x6e   :  { %3335 = vmatprep.subr.bf16.mxu0 %v2645_v54  ;;  %v2706_v54 = vld [vmem:[#allocation2 + $0x460] sm:$0xff]  }
  0x6f   :  { %3365 = vmatpush3.bf16.msra.mxu1 %v2652_v53  ;;  %v2713_v53 = vld [vmem:[#allocation2 + $0x498] sm:$0xff]  }
  0x70   :  { %3367 = vmatprep.subr.bf16.mxu1 %v2661_v55  ;;  %v2722_v55 = vld [vmem:[#allocation2 + $0x4e0] sm:$0xff]  }
  0x71   :  { %3337 = vmatpush3.bf16.msra.mxu0 %v2637_v57  ;;  %v2714_v57 = vld [vmem:[#allocation2 + $0x4a0] sm:$0xff]  }
  0x72   :  { %3371 = vmatprep.subr.bf16.mxu0 %v2670_v59  ;;  %v2723_v59 = vld [vmem:[#allocation2 + $0x4e8] sm:$0xff]  }
  0x73   :  { %3369 = vmatpush3.bf16.msra.mxu1 %v2653_v58  ;;  %v2707_v58 = vld [vmem:[#allocation2 + $0x468] sm:$0xff]  }
  0x74   :  { %3403 = vmatprep.subr.bf16.mxu1 %v2686_v60  ;;  %1287 = vmatmul.mubr.f32.vlgmr.msra.gmra.mrb[4].mxu0 %v3682_v23  ;;  %v2683_v23 = vld [vmem:[#allocation2 + $0x3a8] sm:$0xff]  }
  0x75   :  { %3373 = vmatpush3.bf16.msra.mxu0 %v2662_v63  ;;  %1426 = vmatprep.mubr.f32.mxu0 %v882_v3  ;;  %v2699_v60 = vld [vmem:[#allocation2 + $0x428] sm:$0xff]   ;;  %v2724_v63 = vld [vmem:[#allocation2 + $0x4f0] sm:$0xff]   ;;  %v2709_v3 = vld [vmem:[#allocation2 + $0x478] sm:$0xff]  }
  0x76   :  { %1357 = vmatmul.mubr.f32.vlgmr.msra.gmra.mrb[4].mxu1 %v3685_v24  ;;  %3375 = vmatprep.subr.bf16.mxu0 %v2671_v1  ;;  %v2676_v24 = vld [vmem:[#allocation2 + $0x370] sm:$0xff]  }
  0x77   :  { %3405 = vmatpush3.bf16.msra.mxu1 %v2678_v0  ;;  %1496 = vmatprep.mubr.f32.mxu1 %v883_v4  ;;  %v34_v0 = vld [vmem:[%s3755_s0 + $0x28] sm:$0xff]  ;;  %v2700_v1 = vld [vmem:[#allocation2 + $0x430] sm:$0xff]   ;;  %v2725_v4 = vld [vmem:[#allocation2 + $0x4f8] sm:$0xff]  }
  0x78   :  { %3407 = vmatprep.subr.bf16.mxu1 %v2687_v2  ;;  %v2716_v2 = vld [vmem:[#allocation2 + $0x4b0] sm:$0xff]  }
  0x79   :  { %3377 = vmatpush3.bf16.msra.mxu0 %v2663_v5  ;;  %v901_v5 = vcombine.high %v34_v0, %v34_v0 }
  0x7a   :  { %3379 = vmatprep.subr.bf16.mxu0 %v2672_v7  ;;  %v2717_v7 = vld [vmem:[#allocation2 + $0x4b8] sm:$0xff]  }
  0x7b   :  { %3409 = vmatpush3.bf16.msra.mxu1 %v2679_v6  ;;  %v2701_v6 = vld [vmem:[#allocation2 + $0x438] sm:$0xff]  }
  0x7c   :  { %3411 = vmatprep.subr.bf16.mxu1 %v2688_v8  ;;  %v2734_v8 = vld [vmem:[#allocation2 + $0x540] sm:$0xff]  }
  0x7d   :  { %3381 = vmatpush3.bf16.msra.mxu0 %v2664_v9  ;;  %v2750_v9 = vld [vmem:[#allocation2 + $0x5c0] sm:$0xff]  }
  0x7e   :  { %3383 = vmatprep.subr.bf16.mxu0 %v2673_v11  ;;  %v3730_v11 = vrot.slane %v901_v5, %v3658_v17 }
  0x7f   :  { %3413 = vmatpush3.bf16.msra.mxu1 %v2680_v10  ;;  %v3727_v10 = vrot.slane %v34_v0, %v3658_v17  ;;  %v2727_v17 = vld [vmem:[#allocation2 + $0x508] sm:$0xff]  }
  0x80   :  { %3415 = vmatprep.subr.bf16.mxu1 %v2689_v12  ;;  %v2726_v12 = vld [vmem:[#allocation2 + $0x500] sm:$0xff]  }
  0x81   :  { %3385 = vmatpush3.bf16.msra.mxu0 %v2665_v13  ;;  %v2742_v13 = vld [vmem:[#allocation2 + $0x580] sm:$0xff]  }
  0x82   :  { %3387 = vmatprep.subr.bf16.mxu0 %v2674_v15  ;;  %v2751_v15 = vld [vmem:[#allocation2 + $0x5c8] sm:$0xff]  }
  0x83   :  { %3417 = vmatpush3.bf16.msra.mxu1 %v2681_v14  ;;  %v2735_v14 = vld [vmem:[#allocation2 + $0x548] sm:$0xff]  }
  0x84   :  { %3419 = vmatprep.subr.bf16.mxu1 %v2690_v16  ;;  %v916_v16 = vcombine.high %v3727_v10, %v3727_v10 }
  0x85   :  { %3389 = vmatpush3.bf16.msra.mxu0 %v2666_v18  ;;  %v917_v18 = vcombine.high %v3730_v11, %v3730_v11 }
  0x86   :  { %3391 = vmatprep.subr.bf16.mxu0 %v2675_v20  ;;  %v2736_v20 = vld [vmem:[#allocation2 + $0x550] sm:$0xff]  }
  0x87   :  { %3421 = vmatpush3.bf16.msra.mxu1 %v2682_v19  ;;  %v2743_v19 = vld [vmem:[#allocation2 + $0x588] sm:$0xff]  }
  0x88   :  { %3423 = vmatprep.subr.bf16.mxu1 %v2691_v21  ;;  %v2752_v21 = vld [vmem:[#allocation2 + $0x5d0] sm:$0xff]  }
  0x89   :  { %3393 = vmatpush3.bf16.msra.mxu0 %v2667_v22  ;;  %v2728_v22 = vld [vmem:[#allocation2 + $0x510] sm:$0xff]  }
  0x8a   :  { %3395 = vmatprep.subr.bf16.mxu0 %v2676_v24  ;;  %v2737_v24 = vld [vmem:[#allocation2 + $0x558] sm:$0xff]  }
  0x8b   :  { %3425 = vmatpush3.bf16.msra.mxu1 %v2683_v23  ;;  %v2744_v23 = vld [vmem:[#allocation2 + $0x590] sm:$0xff]  }
  0x8c   :  { %3427 = vmatprep.subr.bf16.mxu1 %v2692_v25  ;;  %v2753_v25 = vld [vmem:[#allocation2 + $0x5d8] sm:$0xff]  }
  0x8d   :  { %3397 = vmatpush3.bf16.msra.mxu0 %v2668_v27  ;;  %v2745_v27 = vld [vmem:[#allocation2 + $0x598] sm:$0xff]  }
  0x8e   :  { %3399 = vmatprep.subr.bf16.mxu0 %v2677_v29  ;;  %v2754_v29 = vld [vmem:[#allocation2 + $0x5e0] sm:$0xff]  }
  0x8f   :  { %3429 = vmatpush3.bf16.msra.mxu1 %v2684_v28  ;;  %v2738_v28 = vld [vmem:[#allocation2 + $0x560] sm:$0xff]  }
  0x90   :  { %3431 = vmatprep.subr.bf16.mxu1 %v2693_v30  ;;  %v2730_v30 = vld [vmem:[#allocation2 + $0x520] sm:$0xff]  }
  0x91   :  { %3401 = vmatpush3.bf16.msra.mxu0 %v2669_v32  ;;  %v2739_v32 = vld [vmem:[#allocation2 + $0x568] sm:$0xff]  }
  0x92   :  { %3435 = vmatprep.subr.bf16.mxu0 %v2702_v34  ;;  %v2731_v34 = vld [vmem:[#allocation2 + $0x528] sm:$0xff]  }
  0x93   :  { %3433 = vmatpush3.bf16.msra.mxu1 %v2685_v33  ;;  %v2755_v33 = vld [vmem:[#allocation2 + $0x5e8] sm:$0xff]  }
  0x94   :  { %3467 = vmatprep.subr.bf16.mxu1 %v2718_v35  ;;  %1427 = vmatmul.mubr.f32.vlgmr.msra.gmra.mrb[6].mxu0 %v3697_v61  ;;  %v2715_v61 = vld [vmem:[#allocation2 + $0x4a8] sm:$0xff]  }
  0x95   :  { %3437 = vmatpush3.bf16.msra.mxu0 %v2694_v38  ;;  %1566 = vmatprep.mubr.f32.mxu0 %v899_v42  ;;  %v2747_v35 = vld [vmem:[#allocation2 + $0x5a8] sm:$0xff]   ;;  %v2732_v38 = vld [vmem:[#allocation2 + $0x530] sm:$0xff]   ;;  %v2733_v42 = vld [vmem:[#allocation2 + $0x538] sm:$0xff]  }
  0x96   :  { %1497 = vmatmul.mubr.f32.vlgmr.msra.gmra.mrb[6].mxu1 %v3700_v62  ;;  %3439 = vmatprep.subr.bf16.mxu0 %v2703_v40  ;;  %v2708_v62 = vld [vmem:[#allocation2 + $0x470] sm:$0xff]   ;;  %v2741_v40 = vld [vmem:[#allocation2 + $0x578] sm:$0xff]  }
  0x97   :  { %3469 = vmatpush3.bf16.msra.mxu1 %v2710_v39  ;;  %1636 = vmatprep.mubr.f32.mxu1 %v900_v43  ;;  %v2748_v39 = vld [vmem:[#allocation2 + $0x5b0] sm:$0xff]   ;;  %v2749_v43 = vld [vmem:[#allocation2 + $0x5b8] sm:$0xff]  }
  0x98   :  { %3471 = vmatprep.subr.bf16.mxu1 %v2719_v41  ;;  %v2757_v41 = vld [vmem:[#allocation2 + $0x5f8] sm:$0xff]  }
  0x99   :  { %3441 = vmatpush3.bf16.msra.mxu0 %v2695_v44 }
  0x9a   :  { %3443 = vmatprep.subr.bf16.mxu0 %v2704_v46  ;;  %v1798_v46 = vld [vmem:[%s3757_s2] ss:$0 sm:$0xff]  ;;  %s3625_s2 = smov [#allocation5]  }
  0x9b   :  { %3473 = vmatpush3.bf16.msra.mxu1 %v2711_v45  ;;  %s1789_s11 = sshll.u32 %s3625_s2, 4  ;;  %s1790_s11 = int_to_ptr.vmem [resolvable:$true] %s1789_s11 }
  0x9c   :  { %3475 = vmatprep.subr.bf16.mxu1 %v2720_v47  ;;  %s3595_s12 = scalar_lea.vmem %s1790_s11, 32  ;;  %p3600_p9 = scmp.lt.s32.totalorder %s1790_s11, %s1790_s11 }
  0x9d   :  { %3445 = vmatpush3.bf16.msra.mxu0 %v2696_v48  ;;  %p3596_p8 = scmp.ne.s32.totalorder %s1790_s11, %s3595_s12  ;;  %p3601_p10 = scmp.lt.s32.totalorder %s3595_s12, %s3595_s12 }
  0x9e   :  { %3447 = vmatprep.subr.bf16.mxu0 %v2705_v50 }
  0x9f   :  { %3477 = vmatpush3.bf16.msra.mxu1 %v2712_v49  ;;  %p3602_p11 = por %p3601_p10, %p3600_p9 }
  0xa0   :  { %3479 = vmatprep.subr.bf16.mxu1 %v2721_v51 }
  0xa1   :  { %3449 = vmatpush3.bf16.msra.mxu0 %v2697_v52  ;;  %p3603_p12 = pnand %p3602_p11, %p3596_p8 }
  0xa2   :  { %3451 = vmatprep.subr.bf16.mxu0 %v2706_v54 }
  0xa3   :  { %3481 = vmatpush3.bf16.msra.mxu1 %v2713_v53 }
  0xa4   :  { %3483 = vmatprep.subr.bf16.mxu1 %v2722_v55 }
  0xa5   :  { %3453 = vmatpush3.bf16.msra.mxu0 %v2698_v56 }
  0xa6   :  { %3455 = vmatprep.subr.bf16.mxu0 %v2707_v58 }
  0xa7   :  { %3485 = vmatpush3.bf16.msra.mxu1 %v2714_v57 }
  0xa8   :  { %3487 = vmatprep.subr.bf16.mxu1 %v2723_v59 }
  0xa9   :  { %3457 = vmatpush3.bf16.msra.mxu0 %v2699_v60 }
  0xaa   :  { %3459 = vmatprep.subr.bf16.mxu0 %v2708_v62 }
  0xab   :  { %3489 = vmatpush3.bf16.msra.mxu1 %v2715_v61 }
  0xac   :  { %3491 = vmatprep.subr.bf16.mxu1 %v2724_v63 }
  0xad   :  { %3461 = vmatpush3.bf16.msra.mxu0 %v2700_v1 }
  0xae   :  { %3463 = vmatprep.subr.bf16.mxu0 %v2709_v3 }
  0xaf   :  { %3493 = vmatpush3.bf16.msra.mxu1 %v2716_v2 }
  0xb0   :  { %3495 = vmatprep.subr.bf16.mxu1 %v2725_v4 }
  0xb1   :  { %3465 = vmatpush3.bf16.msra.mxu0 %v2701_v6 }
  0xb2   :  { %3499 = vmatprep.subr.bf16.mxu0 %v2734_v8 }
  0xb3   :  { %3497 = vmatpush3.bf16.msra.mxu1 %v2717_v7 }
  0xb4   :  { %3531 = vmatprep.subr.bf16.mxu1 %v2750_v9  ;;  %1567 = vmatmul.mubr.f32.vlgmr.msra.gmra.mrb[8].mxu0 %v3712_v36  ;;  %v2740_v36 = vld [vmem:[#allocation2 + $0x570] sm:$0xff]  }
  0xb5   :  { %3501 = vmatpush3.bf16.msra.mxu0 %v2726_v12  ;;  %1706 = vmatprep.mubr.f32.mxu0 %v916_v16 }
  0xb6   :  { %1637 = vmatmul.mubr.f32.vlgmr.msra.gmra.mrb[8].mxu1 %v3715_v37  ;;  %3503 = vmatprep.subr.bf16.mxu0 %v2735_v14  ;;  %v2756_v37 = vld [vmem:[#allocation2 + $0x5f0] sm:$0xff]  }
  0xb7   :  { %3533 = vmatpush3.bf16.msra.mxu1 %v2742_v13  ;;  %1776 = vmatprep.mubr.f32.mxu1 %v917_v18 }
  0xb8   :  { %3535 = vmatprep.subr.bf16.mxu1 %v2751_v15 }
  0xb9   :  { %3505 = vmatpush3.bf16.msra.mxu0 %v2727_v17 }
  0xba   :  { %3507 = vmatprep.subr.bf16.mxu0 %v2736_v20 }
  0xbb   :  { %3537 = vmatpush3.bf16.msra.mxu1 %v2743_v19 }
  0xbc   :  { %3539 = vmatprep.subr.bf16.mxu1 %v2752_v21 }
  0xbd   :  { %3509 = vmatpush3.bf16.msra.mxu0 %v2728_v22 }
  0xbe   :  { %3511 = vmatprep.subr.bf16.mxu0 %v2737_v24 }
  0xbf   :  { %3541 = vmatpush3.bf16.msra.mxu1 %v2744_v23 }
  0xc0   :  { %3543 = vmatprep.subr.bf16.mxu1 %v2753_v25 }
  0xc1   :  { %3513 = vmatpush3.bf16.msra.mxu0 %v2729_v26 }
  0xc2   :  { %3515 = vmatprep.subr.bf16.mxu0 %v2738_v28 }
  0xc3   :  { %3545 = vmatpush3.bf16.msra.mxu1 %v2745_v27 }
  0xc4   :  { %3547 = vmatprep.subr.bf16.mxu1 %v2754_v29 }
  0xc5   :  { %3517 = vmatpush3.bf16.msra.mxu0 %v2730_v30 }
  0xc6   :  { %3519 = vmatprep.subr.bf16.mxu0 %v2739_v32 }
  0xc7   :  { %3549 = vmatpush3.bf16.msra.mxu1 %v2746_v31 }
  0xc8   :  { %3551 = vmatprep.subr.bf16.mxu1 %v2755_v33 }
  0xc9   :  { %3521 = vmatpush3.bf16.msra.mxu0 %v2731_v34 }
  0xca   :  { %3523 = vmatprep.subr.bf16.mxu0 %v2740_v36 }
  0xcb   :  { %3553 = vmatpush3.bf16.msra.mxu1 %v2747_v35 }
  0xcc   :  { %3555 = vmatprep.subr.bf16.mxu1 %v2756_v37 }
  0xcd   :  { %3525 = vmatpush3.bf16.msra.mxu0 %v2732_v38 }
  0xce   :  { %3527 = vmatprep.subr.bf16.mxu0 %v2741_v40 }
  0xcf   :  { %3557 = vmatpush3.bf16.msra.mxu1 %v2748_v39 }
  0xd0   :  { %3559 = vmatprep.subr.bf16.mxu1 %v2757_v41 }
  0xd1   :  { %3529 = vmatpush3.bf16.msra.mxu0 %v2733_v42 }
  0xd3   :  { %3561 = vmatpush3.bf16.msra.mxu1 %v2749_v43 }
  0xd4   :  { %1707 = vmatmul.mubr.f32.vlgmr.msra.gmra.mrb[10].mxu0 %v3727_v10 }
  0xd6   :  { %1777 = vmatmul.mubr.f32.vlgmr.msra.gmra.mrb[10].mxu1 %v3730_v11 }
 0x107   :  { %v2790_v44 = vpop.f32.mrb[0].mxu0 }
 0x108   :  { %v2791_v47 = vpop.f32.mrb[1].mxu0 }
 0x109   :  { %v2825_v45 = vpop.f32.mrb[0].mxu1  ;;  %v2792_v49 = vadd.f32 %v2791_v47, %v2790_v44 }
 0x10a   :  { %v2826_v48 = vpop.f32.mrb[1].mxu1 }
 0x10b   :  { %v2827_v50 = vadd.f32 %v2826_v48, %v2825_v45  ;;  %v1009_v51 = vadd.f32 %v2792_v49, %v1798_v46 }
 0x10d   :  { %v1079_v52 = vadd.f32 %v2827_v50, %v1009_v51 }
 0x127   :  { %v2860_v53 = vpop.f32.mrb[2].mxu0 }
 0x128   :  { %v2861_v55 = vpop.f32.mrb[3].mxu0 }
 0x129   :  { %v2895_v54 = vpop.f32.mrb[2].mxu1  ;;  %v2862_v57 = vadd.f32 %v2861_v55, %v2860_v53 }
 0x12a   :  { %v2896_v56 = vpop.f32.mrb[3].mxu1 }
 0x12b   :  { %v2897_v58 = vadd.f32 %v2896_v56, %v2895_v54  ;;  %v1149_v59 = vadd.f32 %v2862_v57, %v1079_v52 }
 0x12d   :  { %v1219_v60 = vadd.f32 %v2897_v58, %v1149_v59 }
 0x147   :  { %v2930_v61 = vpop.f32.mrb[4].mxu0 }
 0x148   :  { %v2931_v63 = vpop.f32.mrb[5].mxu0 }
 0x149   :  { %v2965_v62 = vpop.f32.mrb[4].mxu1  ;;  %v2932_v1 = vadd.f32 %v2931_v63, %v2930_v61 }
 0x14a   :  { %v2966_v0 = vpop.f32.mrb[5].mxu1 }
 0x14b   :  { %v2967_v2 = vadd.f32 %v2966_v0, %v2965_v62  ;;  %v1289_v3 = vadd.f32 %v2932_v1, %v1219_v60 }
 0x14d   :  { %v1359_v4 = vadd.f32 %v2967_v2, %v1289_v3 }
 0x167   :  { %v3000_v5 = vpop.f32.mrb[6].mxu0 }
 0x168   :  { %v3001_v7 = vpop.f32.mrb[7].mxu0 }
 0x169   :  { %v3035_v6 = vpop.f32.mrb[6].mxu1  ;;  %v3002_v9 = vadd.f32 %v3001_v7, %v3000_v5 }
 0x16a   :  { %v3036_v8 = vpop.f32.mrb[7].mxu1 }
 0x16b   :  { %v3037_v10 = vadd.f32 %v3036_v8, %v3035_v6  ;;  %v1429_v11 = vadd.f32 %v3002_v9, %v1359_v4 }
 0x16d   :  { %v1499_v12 = vadd.f32 %v3037_v10, %v1429_v11 }
 0x187   :  { %v3070_v13 = vpop.f32.mrb[8].mxu0 }
 0x188   :  { %v3071_v15 = vpop.f32.mrb[9].mxu0 }
 0x189   :  { %v3105_v14 = vpop.f32.mrb[8].mxu1  ;;  %v3072_v18 = vadd.f32 %v3071_v15, %v3070_v13 }
 0x18a   :  { %v3106_v16 = vpop.f32.mrb[9].mxu1 }
 0x18b   :  { %v3107_v17 = vadd.f32 %v3106_v16, %v3105_v14  ;;  %v1569_v19 = vadd.f32 %v3072_v18, %v1499_v12 }
 0x18d   :  { %v1639_v20 = vadd.f32 %v3107_v17, %v1569_v19 }
 0x1a7   :  { %v3140_v21 = vpop.f32.mrb[10].mxu0 }
 0x1a8   :  { %v3141_v23 = vpop.f32.mrb[11].mxu0 }
 0x1a9   :  { %v3175_v22 = vpop.f32.mrb[10].mxu1  ;;  %v3142_v25 = vadd.f32 %v3141_v23, %v3140_v21 }
 0x1aa   :  { %v3176_v24 = vpop.f32.mrb[11].mxu1 }
 0x1ab   :  { %v3177_v26 = vadd.f32 %v3176_v24, %v3175_v22  ;;  %v1709_v27 = vadd.f32 %v3142_v25, %v1639_v20 }
 0x1ad   :  { %v1779_v28 = vadd.f32 %v3177_v26, %v1709_v27 }
 0x1af   :  { %1782 = vst [vmem:[#allocation5] sm:$0x3] %v1779_v28 }
 0x1b0   :  { %3606 = shalt.err (!%p3603_p12)
}
 0x1b1   :  { %s3607_s15 = scalar_lea.hbm %s3758_s3, 32 }
 0x1b2   :  { %p3608_p13 = scmp.ne.s32.totalorder %s3758_s3, %s3607_s15  ;;  %p3611_p0 = scmp.lt.u32.totalorder %s3607_s15, %s3758_s3 }
 0x1b4   :  { %p3613_p1 = pnand %p3611_p0, %p3608_p13 }
 0x1b6   :  { %3616 = shalt.err (!%p3613_p1)
}
 0x1b7   :  { %1792 = dma.vmem_to_hbm [thread:$0]  %s1790_s11, 32, %s3758_s3, [#allocation4]  }
 0x1b8   :  { %3619 = dma.done.wait [#allocation4], 32  }
 0x1b9   :  { %3620 = vsyncadd [#allocation4], 4294967264 }
 0x1ba   :  { %1796 = vsyncpa [#allocation3], 1 }
 0x1bb   :  { %1797 = vsyncpa [#allocation4], 1 }

</bundles_post_ra>
